<compile_context>
chip_gen: v7x
topology: tpu7x:2x2x1
jax: 0.10.0
libtpu: 0.0.40
codegen_flags: <defaults>
</compile_context>

<pallas_src>
import functools

import jax
import jax.numpy as jnp
from jax.experimental import pallas as pl
from jax.experimental.pallas import tpu as pltpu


def _round_up(v, m):
    return (v + m - 1) // m * m


def _colsum_kernel(x_ref, acc_ref, *, tm, lane_width, tiles_per_split, p_rows):
    """Accumulate lane-wise column sums of streamed x tiles.

    x_ref:   (tm, lane_width) tile of the lane-packed input.
    acc_ref: (1, 8, lane_width) f32 output block (one per parallel split),
             resident across the inner (reduction) grid axis.
    """
    s = pl.program_id(0)   # parallel split (own output block -> race free)
    j = pl.program_id(1)   # reduction step within the split

    @pl.when(j == 0)
    def _init():
        acc_ref[...] = jnp.zeros_like(acc_ref)

    # Logical tile index / first packed-row index covered by this step.  The x
    # BlockSpec clamps out-of-range tile indices to the last valid tile; the
    # mask below zeroes rows past the true end, which covers both the ragged
    # last tile and fully out-of-range steps.
    t = s * tiles_per_split + j
    row0 = t * tm

    x = x_ref[...].astype(jnp.float32)
    rows = jax.lax.broadcasted_iota(jnp.int32, (tm, lane_width), 0) + row0
    x = jnp.where(rows < p_rows, x, 0.0)

    # Fold tm rows into 8 sublane groups: element-wise VPU adds only, no
    # cross-lane work inside the loop.
    fold = jnp.sum(x.reshape(tm // 8, 8, lane_width), axis=0)
    acc_ref[...] += fold[None]


def model_container_variable_output_type(x, weight, bias, output_type=dict,
                                         target_tile_bytes=4 * 1024 * 1024,
                                         max_splits=2):
    """x: (N, dim); weight: (dim, dim) [out, in] PyTorch layout; bias: (dim,)."""
    n, dim = x.shape
    assert weight.shape == (dim, dim)
    assert bias.shape == (dim,)
    f32 = jnp.float32

    # Tiny parameter reductions + final dot stay in plain JAX (keep W / b out
    # of the kernel's VMEM entirely).
    w_colsum = jnp.sum(weight.astype(f32), axis=0)               # (dim,) sum over out_features
    bias_term = jnp.asarray(n, f32) * jnp.sum(bias.astype(f32))  # N * sum(b)

    # Lane packing: fold 128//dim consecutive rows into one 128-lane row when
    # dim divides 128 (dim=16 -> 8 rows per packed row).  Otherwise the full
    # dim is the lane axis (allowed when it equals the array's last dim).
    if dim < 128 and 128 % dim == 0:
        rows_per_pack = 128 // dim
    else:
        rows_per_pack = 1
    lane_width = dim * rows_per_pack

    n_main = (n // rows_per_pack) * rows_per_pack
    p_rows = n_main // rows_per_pack

    # Remainder rows (< rows_per_pack of them) summed in plain JAX — no pad copy.
    if n_main < n:
        colsum_rem = jnp.sum(x[n_main:].astype(f32), axis=0)
    else:
        colsum_rem = jnp.zeros((dim,), f32)

    if p_rows == 0:
        colsum = colsum_rem
    else:
        x_packed = x[:n_main].reshape(p_rows, lane_width)

        # Tile sizing by bytes (multi-MiB tiles amortize ~0.35us/step overhead),
        # rounded to the (8, lane) grain and capped at the packed row count.
        bytes_per_row = lane_width * x_packed.dtype.itemsize
        tm = max(8, (target_tile_bytes // bytes_per_row) // 8 * 8)
        tm = min(tm, _round_up(p_rows, 8))

        n_tiles = pl.cdiv(p_rows, tm)
        num_splits = max_splits if n_tiles >= max_splits else 1
        tiles_per_split = pl.cdiv(n_tiles, num_splits)
        grid = (num_splits, tiles_per_split)

        kernel = functools.partial(
            _colsum_kernel, tm=tm, lane_width=lane_width,
            tiles_per_split=tiles_per_split, p_rows=p_rows)

        def x_index_map(s, j):
            t = s * tiles_per_split + j
            return (jnp.minimum(t, n_tiles - 1), 0)   # clamp fully-OOB steps

        cost = pl.CostEstimate(
            flops=int(n_main) * int(dim),
            transcendentals=0,
            bytes_accessed=int(x_packed.size * x_packed.dtype.itemsize
                               + num_splits * 8 * lane_width * 4),
        )

        acc = pl.pallas_call(
            kernel,
            out_shape=jax.ShapeDtypeStruct((num_splits, 8, lane_width), f32),
            grid_spec=pltpu.PrefetchScalarGridSpec(
                num_scalar_prefetch=0,
                grid=grid,
                in_specs=[pl.BlockSpec((tm, lane_width), x_index_map)],
                out_specs=pl.BlockSpec((1, 8, lane_width), lambda s, j: (s, 0, 0)),
            ),
            compiler_params=pltpu.CompilerParams(
                dimension_semantics=("parallel", "arbitrary"),
                vmem_limit_bytes=48 * 1024 * 1024,   # headroom on v7x, ample on v5e/v6e
            ),
            cost_estimate=cost,
        )(x_packed)

        # Combine per-split / per-sublane partials and unfold lanes -> columns.
        lane_sums = jnp.sum(acc, axis=(0, 1))                          # (lane_width,)
        colsum = lane_sums.reshape(rows_per_pack, dim).sum(axis=0) + colsum_rem

    loss = jnp.dot(colsum, w_colsum) + bias_term
    if output_type is dict:
        return {"loss": loss}
    return loss


if __name__ == "__main__":
    dim = 16
    batch = 251   # not a multiple of the packing factor -> exercises tail paths

    key = jax.random.PRNGKey(0)
    kx, kw, kb = jax.random.split(key, 3)

    # Deterministic synthetic parameters (PyTorch Linear shapes: W (dim, dim), b (dim,))
    x = jax.random.normal(kx, (batch, dim), dtype=jnp.float32)
    bound = 1.0 / float(dim) ** 0.5
    weight = jax.random.uniform(kw, (dim, dim), minval=-bound, maxval=bound,
                                dtype=jnp.float32)
    bias = jax.random.uniform(kb, (dim,), minval=-bound, maxval=bound,
                              dtype=jnp.float32)

    # Small target tile -> multi-tile, two-split grid even at this tiny size,
    # exercising init/accumulate, the masked partial last tile, and the
    # plain-JAX remainder path.
    out = model_container_variable_output_type(x, weight, bias, output_type=dict,
                                               target_tile_bytes=4096)
    jax.block_until_ready(out["loss"])

    # Sanity check against plain JAX reference of the PyTorch forward.
    ref = jnp.sum(x @ weight.T + bias)
    assert jnp.allclose(out["loss"], ref, rtol=1e-4, atol=1e-2), (out["loss"], ref)

    print("KERNEL_OK")
</pallas_src>

<mosaic_0001>
module attributes {stable_mosaic.version = 11 : i64} {
  func.func @_colsum_kernel(%arg0: i32, %arg1: i32, %arg2: memref<8x128xf32, #tpu.memory_space<vmem>>, %arg3: memref<1x8x128xf32, #tpu.memory_space<vmem>>) attributes {dimension_semantics = [#tpu.dimension_semantics<parallel>, #tpu.dimension_semantics<arbitrary>], iteration_bounds = array<i64: 2, 2>, scalar_prefetch = 0 : i64, scratch_operands = 0 : i64, tpu.core_type = #tpu.core_type<tc>, window_params = [{transform_indices = @transform_0, window_bounds = array<i64: 8, 128>}, {transform_indices = @transform_1, window_bounds = array<i64: 1, 8, 128>}]} {
    %c0_i32 = arith.constant 0 : i32
    %0 = arith.cmpi eq, %arg1, %c0_i32 : i32
    %1 = arith.extui %0 : i1 to i32
    %c0_i32_0 = arith.constant 0 : i32
    %2 = arith.cmpi ne, %1, %c0_i32_0 : i32
    scf.if %2 {
      %cst_9 = arith.constant 0.000000e+00 : f32
      %20 = vector.broadcast %cst_9 : f32 to vector<1x8x128xf32>
      %c0_10 = arith.constant 0 : index
      %c0_11 = arith.constant 0 : index
      %c0_12 = arith.constant 0 : index
      %21 = vector.load %arg3[%c0_10, %c0_11, %c0_12] : memref<1x8x128xf32, #tpu.memory_space<vmem>>, vector<1x8x128xf32>
      tpu.vector_store %arg3[%c0_10, %c0_11, %c0_12], %20 {strides = array<i32>} : memref<1x8x128xf32, #tpu.memory_space<vmem>>, vector<1x8x128xf32>,
    } else {
    }
    %c2_i32 = arith.constant 2 : i32
    %3 = arith.muli %arg0, %c2_i32 : i32
    %4 = arith.addi %3, %arg1 : i32
    %c8_i32 = arith.constant 8 : i32
    %5 = arith.muli %4, %c8_i32 : i32
    %c0 = arith.constant 0 : index
    %c0_1 = arith.constant 0 : index
    %6 = vector.load %arg2[%c0, %c0_1] : memref<8x128xf32, #tpu.memory_space<vmem>>, vector<8x128xf32>
    %7 = tpu.iota {dimensions = array<i32: 0>} : vector<8x128xi32>
    %8 = vector.broadcast %5 : i32 to vector<8x128xi32>
    %9 = arith.addi %7, %8 : vector<8x128xi32>
    %c31_i32 = arith.constant 31 : i32
    %10 = vector.broadcast %c31_i32 : i32 to vector<8x128xi32>
    %11 = arith.cmpi slt, %9, %10 : vector<8x128xi32>
    %cst = arith.constant 0.000000e+00 : f32
    %12 = vector.broadcast %cst : f32 to vector<8x128xf32>
    %13 = arith.select %11, %6, %12 : vector<8x128xi1>, vector<8x128xf32>
    %14 = vector.shape_cast %13 : vector<8x128xf32> to vector<1x8x128xf32>
    %cst_2 = arith.constant dense<0.000000e+00> : vector<8x128xf32>
    %15 = vector.multi_reduction <add>, %14, %cst_2 [0] : vector<1x8x128xf32> to vector<8x128xf32>
    %c0_3 = arith.constant 0 : index
    %c0_4 = arith.constant 0 : index
    %c0_5 = arith.constant 0 : index
    %16 = vector.load %arg3[%c0_3, %c0_4, %c0_5] : memref<1x8x128xf32, #tpu.memory_space<vmem>>, vector<1x8x128xf32>
    %17 = vector.shape_cast %15 : vector<8x128xf32> to vector<1x8x128xf32>
    %18 = arith.addf %16, %17 : vector<1x8x128xf32>
    %c0_6 = arith.constant 0 : index
    %c0_7 = arith.constant 0 : index
    %c0_8 = arith.constant 0 : index
    %19 = vector.load %arg3[%c0_6, %c0_7, %c0_8] : memref<1x8x128xf32, #tpu.memory_space<vmem>>, vector<1x8x128xf32>
    tpu.vector_store %arg3[%c0_6, %c0_7, %c0_8], %18 {strides = array<i32>} : memref<1x8x128xf32, #tpu.memory_space<vmem>>, vector<1x8x128xf32>,
    return
  }
  func.func @transform_0(%arg0: i32, %arg1: i32) -> (i32, i32) {
    %c2_i32 = arith.constant 2 : i32
    %0 = arith.muli %arg0, %c2_i32 : i32
    %1 = arith.addi %0, %arg1 : i32
    %c3_i32 = arith.constant 3 : i32
    %2 = arith.minsi %1, %c3_i32 : i32
    %c0_i32 = arith.constant 0 : i32
    %c0_i32_0 = arith.constant 0 : i32
    return %2, %c0_i32 : i32, i32
  }
  func.func @transform_1(%arg0: i32, %arg1: i32) -> (i32, i32, i32) {
    %c0_i32 = arith.constant 0 : i32
    %c0_i32_0 = arith.constant 0 : i32
    %c0_i32_1 = arith.constant 0 : i32
    return %arg0, %c0_i32, %c0_i32_0 : i32, i32, i32
  }
}

</mosaic_0001>

<bundles_post_ra>
// kernel: tpu_custom_call.1
= control target key start
LH: loop header
LB: loop body
LE: loop exit
PB: predicated region body
PF: predicated region fallthrough
CT: control target
= control target key end

     0   :  { %6 = vsyncpa [#allocation3], 0  ;;  %s793_s0 = inlined_call_operand.hbm [shape: f32[31,128], index: 0, kind: input, shape index: {}]   ;;  %s794_s1 = inlined_call_operand.hbm [shape: f32[2,8,128], index: 1, kind: output, shape index: {}]  }
   0x1   :  { %8 = vsyncpa [#allocation3 + $0x1], 0 }
   0x2   :  { %9 = vsyncpa [#allocation4], 0 }
   0x3   :  { %11 = vsyncpa [#allocation4 + $0x1], 0  ;;  %s563_s6 = smov 0   ;;  %s565_s7 = smov 0  }
   0x4   :  { %s567_s8 = smov 0   ;;  %s569_s9 = smov 0  }
   0x5   :  { %s571_s10 = smov 0   ;;  %s573_s11 = smov 0  }
   0x6   :  { %s575_s12 = smov 0   ;;  %s577_s13 = smov 0  }
   0x7   :  { %s579_s14 = smov 0   ;;  %s581_s15 = smov 0  }
   0x8   :  { %s583_s16 = smov 0  }
   0x9 LB: > { %s274_s17 = sadd.s32 4294967295, %s548_s16   ;;  %s275_s18 = sadd.s32 4294967294, %s548_s16   ;;  %s548_s16 = sphi %s583_s16, %s17_s16   ;;  %s544_s15 = sphi %s581_s15, %s814_s15   ;;  %s540_s14 = sphi %s579_s14, %s813_s14   ;;  %s536_s13 = sphi %s577_s13, %s812_s13   ;;  %s532_s12 = sphi %s575_s12, %s811_s12   ;;  %s528_s11 = sphi %s573_s11, %s810_s11   ;;  %s524_s10 = sphi %s571_s10, %s809_s10   ;;  %s520_s9 = sphi %s569_s9, %s808_s9   ;;  %s516_s8 = sphi %s567_s8, %s807_s8   ;;  %s512_s7 = sphi %s565_s7, %s806_s7   ;;  %s508_s6 = sphi %s563_s6, %s805_s6  }
   0xa   : > { %s26_s19 = sadd.s32 1, %s540_s14  ;;  %s29_s20 = sadd.s32 1, %s544_s15 }
   0xb   : > { %p27_p0 = scmp.ge.s32.totalorder %s26_s19, 2  ;;  %s276_s21 = sshll.u32 %s544_s15, 1 }
   0xc   : > { %s34_s22 = sadd.s32 %s540_s14, %s276_s21  ;;  %s44_s23 = sadd.s32 1, %s528_s11 }
   0xd   : > { %s816_s19 = smov (%p27_p0, %s26_s19), 0  ;;  %s818_s20 = smov (!%p27_p0, %s29_s20), %s544_s15 }
   0xe   : > { %p35_p1 = scmp.lt.s32.totalorder %s34_s22, 3  ;;  %p51_p2 = scmp.ne.s32.totalorder %s528_s11, %s524_s10 }
   0xf   : > { %p31_p3 = scmp.ge.s32.totalorder %s818_s20, 2  ;;  %p52_p4 = scmp.eq.s32.totalorder %s548_s16, 0 }
  0x10   : > { %s820_s22 = smov (!%p35_p1, %s34_s22), 3  ;;  %p57_p6 = scmp.ne.s32.totalorder %s524_s10, %s520_s9 }
  0x11   : > { %s822_s20 = smov (%p31_p3, %s818_s20), 0  ;;  %p633_p5 = por %p52_p4, %p51_p2 }
  0x12   : > { %s277_s25 = sshll.u32 %s822_s20, 1  ;;  %p58_p7 = scmp.eq.s32.totalorder %s274_s17, 0 }
  0x13   : > { %s38_s26 = sadd.s32 %s277_s25, %s816_s19  ;;  %s67_s27 = ssub.s32 %s544_s15, %s822_s20 }
  0x14   : > { %p39_p8 = scmp.lt.s32.totalorder %s38_s26, 3  ;;  %p645_p9 = por %p58_p7, %p57_p6 }
  0x15   : > { %p68_p10 = scmp.eq.s32.totalorder %s67_s27, 0  ;;  %s70_s29 = sadd.s32 1, %s516_s8 }
  0x16   : > { %s824_s26 = smov (!%p39_p8, %s38_s26), 3  ;;  %p80_p11 = scmp.ne.s32.totalorder %s516_s8, %s512_s7 }
  0x17   : > { %s651_s30 = scalar_select %p68_p10, %s516_s8, %s70_s29  }
  0x18   : > { %s41_s2 = ssub.s32 %s820_s22, %s824_s26  ;;  %p81_p13 = scmp.eq.s32.totalorder %s274_s17, 3 }
  0x19   : > { %p42_p12 = scmp.eq.s32.totalorder %s41_s2, 0  ;;  %p86_p0 = scmp.ne.s32.totalorder %s512_s7, %s508_s6 }
  0x1a   : > { %p87_p1 = scmp.eq.s32.totalorder %s275_s18, 3  ;;  %p664_p2 = por %p81_p13, %p80_p11 }
  0x1b   : > { %s662_s3 = scalar_select %p42_p12, %s528_s11, %s44_s23  }
  0x1c   : > { %s798_s4 = scalar_select %p664_p2, 1, 0 }
  0x1d   : > { %p668_p3 = por %p87_p1, %p86_p0  ;;  %p305_p4 = scmp.lt.s32.totalorder %s548_s16, 4 }
  0x1e   : > { %s107_s9 = sand.u32 1, %s528_s11   ;;  %s282_s21 = sshll.u32 %s820_s22, 7 }
  0x1f   : > { %s799_s5 = scalar_select %p668_p3, 1, 0 }
  0x20   : > { %s280_s25 = sshll.u32 %s107_s9, 3  ;;  %s677_s27 = scalar_lea.hbm %s793_s0, %s282_s21 }
  0x21   : > { %s111_s18 = scalar_lea.vmem [#allocation2], %s280_s25  ;;  %p681_p6 = pnand %p305_p4, %p633_p5 }
  0x22   : > { %s122_s23 = sshll.u32 %s111_s18, 4  ;;  %s108_s22 = scalar_lea.sflag [#allocation3], %s107_s9  ;;  %s685_s23 = int_to_ptr.vmem [resolvable:$true] %s122_s23 }
  0x23   : > { %s396_s2 = scalar_lea.hbm %s677_s27, 128  ;;  %p398_p11 = pneg %p681_p6 }
  0x24   : > { %p397_p10 = scmp.ne.s32.totalorder %s677_s27, %s396_s2  ;;  %s401_s25 = scalar_lea.hbm %s793_s0, 512 }
  0x25   : > { %p402_p5 = scmp.lt.u32.totalorder %s677_s27, %s793_s0  ;;  %p403_p0 = scmp.lt.u32.totalorder %s401_s25, %s396_s2 }
  0x26   : > { %p399_p12 = pnand %p398_p11, %p397_p10  ;;  %p405_p4 = scmp.lt.u32.totalorder %s396_s2, %s677_s27 }
  0x27   : > { %p404_p1 = por %p403_p0, %p402_p5 }
  0x28   : > { %p400_p13 = pneg %p399_p12 }
  0x29   : > { %p406_p7 = por %p405_p4, %p404_p1 }
  0x2b   : > { %p407_p8 = pnand %p406_p7, %p400_p13 }
  0x2d   : > { %410 = shalt.err (!%p407_p8)
}
  0x2e   : > { %s411_s9 = scalar_lea.vmem %s685_s23, 128  ;;  %s550_s18 = smov [#allocation2]  }
  0x2f   : > { %p412_p10 = scmp.ne.s32.totalorder %s685_s23, %s411_s9  ;;  %s416_s24 = sshll.u32 %s550_s18, 4  ;;  %s417_s24 = int_to_ptr.vmem [resolvable:$false] %s416_s24 }
  0x30   : > { %s418_s21 = scalar_lea.vmem %s417_s24, 256  ;;  %p419_p2 = scmp.lt.s32.totalorder %s685_s23, %s417_s24 }
  0x31   : > { %p414_p12 = pnand %p412_p10, %p398_p11  ;;  %p420_p5 = scmp.lt.s32.totalorder %s418_s21, %s411_s9 }
  0x33   : > { %p415_p3 = pneg %p414_p12  ;;  %p421_p0 = por %p420_p5, %p419_p2 }
  0x35   : > { %p422_p1 = pnand %p421_p0, %p415_p3 }
  0x37   : > { %425 = shalt.err (!%p422_p1)
}
  0x38   : > { %300 = dma.hbm_to_vmem [thread:$0]  (!%p681_p6), %s677_s27, 128, %s685_s23, %s108_s22  }
  0x39   : > { %p801_p7 = scmp.lt.s32.totalorder %s548_s16, 5  ;;  %p802_p8 = scmp.ge.s32.totalorder %s548_s16, 1 }
  0x3b   : > { %p128_p11 = pnand %p802_p8, %p801_p7 }
  0x3c   : > { %s133_s2 = sand.u32 (!%p128_p11), 1, %s524_s10  }
  0x3d   : > { %131 = sbr.rel (%p128_p11) target bundleno = 105 (0x69), region = 24  ;;  %s284_s25 = sshll.u32 (!%p128_p11), %s133_s2, 3 }
  0x3e   : > { %s134_s26 = scalar_lea.sflag (!%p128_p11), [#allocation3], %s133_s2  ;;  %s137_s17 = scalar_lea.vmem (!%p128_p11), [#allocation2], %s284_s25 }
  0x44   : > { %499 = dma.done.wait (%p645_p9), %s134_s26, 128  }
  0x45   : > { %501 = vsyncadd (%p645_p9), %s134_s26, 4294967168  ;;  %s153_s29 = sand.u32 1, %s512_s7   ;;  %p286_p2 = scmp.ne.s32.totalorder %s532_s12, 0 }
  0x46   : > { %s285_s9 = sshll.u32 %s153_s29, 3  ;;  %v551_v0 = vmov (!%p286_p2), 0.0  }
  0x47   : > { %s155_s18 = scalar_lea.vmem [#allocation5], %s285_s9  ;;  %163 = sbr.rel (%p286_p2) target bundleno = 78 (0x4e), region = 32 }
  0x48   : > { %164 = vst [vmem:[%s155_s18] sm:$0xff] (!%p286_p2), %v551_v0 }
  0x4e PF: > { %s287_s27 = sshll.u32 %s536_s13, 1  ;;  %v169_v1 = vlaneseq  ;;  %v168_v4 = vld [vmem:[%s137_s17] sm:$0xff]  ;;  %s290_s28 = sshll.u32 %s536_s13, 7 }
  0x4f   : > { %s166_s23 = sadd.s32 %s532_s12, %s287_s27  ;;  %v176_v6 = vld [vmem:[%s155_s18] sm:$0xff]  ;;  %s193_s24 = sshll.u32 %s155_s18, 4  ;;  %s733_s24 = int_to_ptr.vmem [resolvable:$true] %s193_s24 }
  0x50   : > { %s288_s22 = sshll.u32 %s166_s23, 3  ;;  %v170_v2 = vshrl.u32 %v169_v1, 7  ;;  %s731_s25 = scalar_lea.hbm %s794_s1, %s290_s28 }
  0x51   : > { %v171_v3 = vstv %s288_s22  ;;  %s180_s12 = scalar_lea.sflag [#allocation4], %s153_s29  ;;  %s426_s26 = scalar_lea.vmem %s733_s24, 128 }
  0x52   : > { %v172_v5 = vadd.s32 %v171_v3, %v170_v2  ;;  %p427_p9 = scmp.ne.s32.totalorder %s733_s24, %s426_s26  ;;  %p803_p3 = scmp.ne.s32.totalorder %s798_s4, 0 }
  0x53   : > { %s552_s13 = smov [#allocation5]  }
  0x54   : > { %vm173_vm0 = vcmp.lt.s32.totalorder %v172_v5, 31  ;;  %p428_p6 = pnand %p427_p9, %p803_p3  ;;  %s430_s17 = sshll.u32 %s552_s13, 4  ;;  %s431_s17 = int_to_ptr.vmem [resolvable:$false] %s430_s17 }
  0x55   : > { %v174_v7 = vsel %vm173_vm0, %v168_v4, 0.0  ;;  %s432_s9 = scalar_lea.vmem %s431_s17, 256  ;;  %p433_p4 = scmp.lt.s32.totalorder %s733_s24, %s431_s17 }
  0x56   : > { %v177_v8 = vadd.f32 %v176_v6, %v174_v7  ;;  %p429_p13 = pneg %p428_p6  ;;  %p434_p10 = scmp.lt.s32.totalorder %s432_s9, %s426_s26 }
  0x58   : > { %178 = vst [vmem:[%s155_s18] sm:$0xff] %v177_v8  ;;  %p435_p12 = por %p434_p10, %p433_p4 }
  0x5a   : > { %p436_p5 = pnand %p435_p12, %p429_p13 }
  0x5c   : > { %439 = shalt.err (!%p436_p5)
}
  0x5d   : > { %s440_s29 = scalar_lea.hbm %s731_s25, 128  ;;  %s444_s23 = scalar_lea.hbm %s794_s1, 256 }
  0x5e   : > { %p441_p0 = scmp.ne.s32.totalorder %s731_s25, %s440_s29  ;;  %p445_p8 = scmp.lt.u32.totalorder %s731_s25, %s794_s1 }
  0x5f   : > { %p446_p11 = scmp.lt.u32.totalorder %s444_s23, %s440_s29  ;;  %p448_p9 = scmp.lt.u32.totalorder %s440_s29, %s731_s25 }
  0x60   : > { %p442_p1 = pnand %p441_p0, %p803_p3 }
  0x61   : > { %p447_p2 = por %p446_p11, %p445_p8 }
  0x62   : > { %p443_p7 = pneg %p442_p1 }
  0x63   : > { %p449_p6 = por %p448_p9, %p447_p2 }
  0x65   : > { %p450_p13 = pnand %p449_p6, %p443_p7 }
  0x67   : > { %453 = shalt.err (!%p450_p13)
}
  0x68   : > { %295 = dma.vmem_to_hbm [thread:$0]  (%p803_p3), %s733_s24, 128, %s731_s25, %s180_s12  }
  0x69 PF: > { %p306_p4 = scmp.ge.s32.totalorder %s548_s16, 2  ;;  %s205_s21 = sand.u32 1, %s508_s6  }
  0x6a   : > { %p804_p10 = scmp.ne.s32.totalorder %s799_s5, 0  ;;  %s206_s2 = scalar_lea.sflag [#allocation4], %s205_s21 }
  0x6c   : > { %p302_p12 = pnand %p306_p4, %p804_p10 }
  0x6e   : > { %503 = dma.done.wait (!%p302_p12), %s206_s2, 128  }
  0x6f   : > { %505 = vsyncadd (!%p302_p12), %s206_s2, 4294967168  ;;  %s17_s16 = sadd.s32 1, %s548_s16   ;;  %s805_s6 = smov %s512_s7 }
  0x70   : > { %p14_p5 = scmp.ge.s32.totalorder %s17_s16, 6   ;;  %s806_s7 = smov %s516_s8 }
  0x71   : > { %s807_s8 = smov %s651_s30  ;;  %s808_s9 = smov %s524_s10 }
  0x72   : > { %s809_s10 = smov %s528_s11  ;;  %s810_s11 = smov %s662_s3 }
  0x73   : > { %s811_s12 = smov %s540_s14  ;;  %s812_s13 = smov %s544_s15 }
  0x74   : > { %s813_s14 = smov %s816_s19  ;;  %s814_s15 = smov %s822_s20 }
  0x75   :  { %16 = sbr.rel (!%p14_p5) target bundleno = 9 (0x9), region = 73 }
  0x7c   :  { %211 = vsyncpa [#allocation3], 1 }
  0x7d   :  { %213 = vsyncpa [#allocation3 + $0x1], 1 }
  0x7e   :  { %214 = vsyncpa [#allocation4], 1 }
  0x7f   :  { %216 = vsyncpa [#allocation4 + $0x1], 1 }

</bundles_post_ra>
